<compile_context>
chip_gen: v5e
topology: v5e:2x2
jax: 0.10.0
libtpu: 0.0.40
codegen_flags: <defaults>
</compile_context>

<pallas_src>
import functools

import jax
import jax.numpy as jnp
from jax.experimental import pallas as pl
from jax.experimental.pallas import tpu as pltpu

H = 1280        # GPT2-large hidden size (nn.Linear(1280, 400))
D_REG = 400     # regression hidden size


def _round_up(x, m):
    return ((x + m - 1) // m) * m


# ---------------------------------------------------------------------------
# Kernel 1: fused LM head (hidden @ W_lm) tiled over (rows, vocab) with online
# logsumexp; emits masked per-row CE losses (lane-broadcast, lane-dense store).
# ---------------------------------------------------------------------------
def _make_lm_loss_kernel(n_vtiles, v_actual, v_padded, tn):
    needs_colmask = (v_padded != v_actual)

    def kernel(hid_ref, w_ref, tgt_ref, out_ref, m_sc, l_sc, t_sc):
        v = pl.program_id(1)

        @pl.when(v == 0)
        def _():
            m_sc[...] = jnp.full_like(m_sc, -jnp.inf)
            l_sc[...] = jnp.zeros_like(l_sc)
            t_sc[...] = jnp.zeros_like(t_sc)

        # [tm, tn] logits for this vocab tile; bf16 operands, f32 accumulation.
        logits = jnp.dot(hid_ref[...], w_ref[...],
                         preferred_element_type=jnp.float32)
        col = jax.lax.broadcasted_iota(jnp.int32, logits.shape, 1) + v * tn
        if needs_colmask:  # vocab padded up to a tile multiple
            logits = jnp.where(col < v_actual, logits, -1e30)

        tgt = tgt_ref[...]                                     # [tm, 1] int32
        # accumulate the target logit (targets are < v_actual, or -1 if masked)
        t_sc[...] += jnp.sum(jnp.where(col == tgt, logits, 0.0),
                             axis=-1, keepdims=True)

        # online logsumexp across vocab tiles
        m_prev = m_sc[...]
        m_new = jnp.maximum(m_prev, jnp.max(logits, axis=-1, keepdims=True))
        l_sc[...] = (l_sc[...] * jnp.exp(m_prev - m_new)
                     + jnp.sum(jnp.exp(logits - m_new), axis=-1, keepdims=True))
        m_sc[...] = m_new

        @pl.when(v == n_vtiles - 1)
        def _():
            lse = m_sc[...] + jnp.log(l_sc[...])               # [tm, 1]
            loss = lse - t_sc[...]                             # per-token CE
            # [NUM] positions (and row padding) carry target == -1 -> zero loss
            loss = jnp.where(tgt[...] < 0, 0.0, loss)
            out_ref[...] = jnp.broadcast_to(loss, out_ref.shape)

    return kernel


def lm_loss_pallas(hidden_flat, w_lm, masked_targets, *, tm=None, tn=None):
    BS, Hd = hidden_flat.shape
    V = w_lm.shape[1]

    # Row tile: multiple of 16 (bf16 sublane packing); 128 at real batch sizes.
    if tm is None:
        tm = 128 if BS >= 128 else _round_up(BS, 16)
    BSp = _round_up(BS, tm)
    # Vocab tile: bf16 (H, tn) tile at tn=2048 is ~5.2 MB -> ~10.5 MB double-
    # buffered, safe under the 32 MiB default scoped VMEM on v5e/v6e/v7x.
    if tn is None:
        tn = min(2048, _round_up(V, 128))
    Vp = _round_up(V, tn)

    if BSp != BS:
        hidden_flat = jnp.pad(hidden_flat, ((0, BSp - BS), (0, 0)))
        masked_targets = jnp.pad(masked_targets, ((0, BSp - BS), (0, 0)),
                                 constant_values=-1)
    if Vp != V:
        w_lm = jnp.pad(w_lm, ((0, 0), (0, Vp - V)))

    # bf16 matmul operands (MXU-native on all generations); CE math stays f32.
    hid_bf16 = hidden_flat.astype(jnp.bfloat16)
    w_bf16 = w_lm.astype(jnp.bfloat16)
    masked_targets = masked_targets.astype(jnp.int32)

    n_rtiles = BSp // tm
    n_vtiles = Vp // tn
    kernel = _make_lm_loss_kernel(n_vtiles, V, Vp, tn)

    cost = pl.CostEstimate(
        flops=2 * BSp * Hd * Vp,
        transcendentals=BSp * Vp,
        bytes_accessed=(hid_bf16.size * 2 + w_bf16.size * 2
                        + masked_targets.size * 4 + BSp * 128 * 4),
    )

    out = pl.pallas_call(
        kernel,
        out_shape=jax.ShapeDtypeStruct((BSp, 128), jnp.float32),
        grid_spec=pltpu.PrefetchScalarGridSpec(
            num_scalar_prefetch=0,
            grid=(n_rtiles, n_vtiles),
            in_specs=[
                pl.BlockSpec((tm, Hd), lambda i, v: (i, 0)),   # hidden row tile
                pl.BlockSpec((Hd, tn), lambda i, v: (0, v)),   # weight vocab tile
                pl.BlockSpec((tm, 1), lambda i, v: (i, 0)),    # masked targets
            ],
            out_specs=pl.BlockSpec((tm, 128), lambda i, v: (i, 0)),
            scratch_shapes=[pltpu.VMEM((tm, 1), jnp.float32)] * 3,  # m, l, tgt
        ),
        compiler_params=pltpu.CompilerParams(
            dimension_semantics=("parallel", "arbitrary")),
        cost_estimate=cost,
    )(hid_bf16, w_bf16, masked_targets)

    # mean over ALL B*S tokens (masked / padded rows contribute 0), matching
    # torch.where(~num_indices, loss, 0).mean()
    return jnp.sum(out[:, 0]) / BS


# ---------------------------------------------------------------------------
# Kernel 2: num_regression MLP (1280 -> 400 -> ReLU -> 1) + MSE -> scalar.
# Second layer (N=1) is done on the VPU/XLU (row-wise reduce), not the MXU.
# ---------------------------------------------------------------------------
def _num_loss_kernel(reps_ref, w1_ref, b1_ref, w2t_ref, b2_ref, y_ref, out_ref):
    h = jnp.dot(reps_ref[...], w1_ref[...],
                preferred_element_type=jnp.float32) + b1_ref[...]     # [K, 400]
    h = jnp.maximum(h, 0.0)                                           # ReLU
    # (400 -> 1) as an elementwise multiply + cross-lane reduce
    pred = jnp.sum(h * w2t_ref[...], axis=-1, keepdims=True) + b2_ref[0, 0]
    diff = pred - y_ref[...]                                          # [K, 1]
    n = diff.shape[0] * diff.shape[1]
    out_ref[0, 0] = jnp.sum(diff * diff) / n                          # MSE mean


def num_loss_pallas(reps, w1, b1, w2, b2, y):
    w2t = w2.reshape(1, w2.shape[0]).astype(jnp.float32)              # [1, 400]
    return pl.pallas_call(
        _num_loss_kernel,
        out_shape=jax.ShapeDtypeStruct((1, 1), jnp.float32),
        in_specs=[
            pl.BlockSpec(memory_space=pltpu.MemorySpace.VMEM),        # reps
            pl.BlockSpec(memory_space=pltpu.MemorySpace.VMEM),        # w1
            pl.BlockSpec(memory_space=pltpu.MemorySpace.VMEM),        # b1
            pl.BlockSpec(memory_space=pltpu.MemorySpace.VMEM),        # w2 (row)
            pl.BlockSpec(memory_space=pltpu.MemorySpace.SMEM),        # b2 scalar
            pl.BlockSpec(memory_space=pltpu.MemorySpace.VMEM),        # y
        ],
        out_specs=pl.BlockSpec(memory_space=pltpu.MemorySpace.VMEM),
    )(reps, w1, b1, w2t, b2, y)[0, 0]


# ---------------------------------------------------------------------------
# TabGPT.forward equivalent
# ---------------------------------------------------------------------------
def tabgpt_forward(tokens, hidden, w_lm, w1, b1, w2, b2, numbers,
                   num_token_id, num_loss_weight, K, *, tm=None, tn=None):
    B, S = tokens.shape
    Hd = hidden.shape[-1]
    num_indices = tokens == num_token_id                              # [B, S]

    hidden_flat = hidden.reshape(B * S, Hd)
    # Fold the [NUM] mask into the targets: masked rows get target -1, so the
    # kernel zeroes their loss (== torch.where(~num_indices, loss, 0)).
    masked_targets = jnp.where(num_indices, -1, tokens).reshape(B * S, 1)
    lm_loss = lm_loss_pallas(hidden_flat, w_lm, masked_targets.astype(jnp.int32),
                             tm=tm, tn=tn)

    # gather hidden states at [NUM] positions (index-select semantics)
    # TODO(synk): could be fused into the num-loss kernel via scalar-prefetched
    # row indices + pl.Element blocks; negligible at small K.
    flat_idx = jnp.nonzero(num_indices.reshape(-1), size=K)[0]
    reps = jnp.take(hidden_flat, flat_idx, axis=0)                    # [K, H]
    num_loss = num_loss_pallas(reps, w1, b1, w2, b2, numbers[0])

    ovr_loss = lm_loss + num_loss_weight * num_loss
    return ovr_loss, lm_loss, num_loss


if __name__ == "__main__":
    key = jax.random.PRNGKey(0)
    B, S = 2, 8          # small batch / seq
    V = 256              # small synthetic vocab (stand-in for GPT-2 vocab)
    K = 4                # number of [NUM] tokens in the batch
    num_token_id = V - 1
    num_loss_weight = 0.5

    k1, k2, k3, k4, k5, k6 = jax.random.split(key, 6)

    tokens = jax.random.randint(k1, (B, S), 0, V - 1).astype(jnp.int32)
    tokens = tokens.at[0, 2].set(num_token_id).at[0, 5].set(num_token_id)
    tokens = tokens.at[1, 1].set(num_token_id).at[1, 6].set(num_token_id)

    # TODO(synk): GPT-2 backbone (self.gpt2) is a HF checkpoint load; its
    # last-layer hidden states are synthesized here.
    hidden = jax.random.normal(k2, (B, S, H), dtype=jnp.float32) * 0.02
    w_lm = jax.random.normal(k3, (H, V), dtype=jnp.float32) * 0.02      # LM head
    w1 = jax.random.normal(k4, (H, D_REG), dtype=jnp.float32) * 0.02    # Linear(1280,400)
    b1 = jnp.zeros((1, D_REG), dtype=jnp.float32)
    w2 = jax.random.normal(k5, (D_REG, 1), dtype=jnp.float32) * 0.02    # Linear(400,1)
    b2 = jnp.zeros((1, 1), dtype=jnp.float32)
    numbers = jax.random.normal(k6, (1, K, 1), dtype=jnp.float32)       # numbers[0]: [K,1]

    # tn=128 so the toy run exercises the multi-vocab-tile online-logsumexp path.
    ovr_loss, lm_loss, num_loss = tabgpt_forward(
        tokens, hidden, w_lm, w1, b1, w2, b2, numbers,
        num_token_id, num_loss_weight, K, tn=128)

    jax.block_until_ready((ovr_loss, lm_loss, num_loss))
    print("KERNEL_OK")
</pallas_src>

<mosaic_0001>
module attributes {stable_mosaic.version = 11 : i64} {
  func.func @kernel(%arg0: i32, %arg1: i32, %arg2: memref<16x1280xbf16, #tpu.memory_space<vmem>>, %arg3: memref<1280x128xbf16, #tpu.memory_space<vmem>>, %arg4: memref<16x1xi32, #tpu.memory_space<vmem>>, %arg5: memref<16x128xf32, #tpu.memory_space<vmem>>, %arg6: memref<16x1xf32, #tpu.memory_space<vmem>>, %arg7: memref<16x1xf32, #tpu.memory_space<vmem>>, %arg8: memref<16x1xf32, #tpu.memory_space<vmem>>) attributes {dimension_semantics = [#tpu.dimension_semantics<parallel>, #tpu.dimension_semantics<arbitrary>], iteration_bounds = array<i64: 1, 2>, scalar_prefetch = 0 : i64, scratch_operands = 3 : i64, tpu.core_type = #tpu.core_type<tc>, window_params = [{transform_indices = @transform_0, window_bounds = array<i64: 16, 1280>}, {transform_indices = @transform_1, window_bounds = array<i64: 1280, 128>}, {transform_indices = @transform_2, window_bounds = array<i64: 16, 1>}, {transform_indices = @transform_3, window_bounds = array<i64: 16, 128>}]} {
    %c0_i32 = arith.constant 0 : i32
    %0 = arith.cmpi eq, %arg1, %c0_i32 : i32
    %1 = arith.extui %0 : i1 to i32
    %c0_i32_0 = arith.constant 0 : i32
    %2 = arith.cmpi ne, %1, %c0_i32_0 : i32
    scf.if %2 {
      %cst_23 = arith.constant 0xFF800000 : f32
      %39 = vector.broadcast %cst_23 : f32 to vector<16x1xf32>
      %c0_24 = arith.constant 0 : index
      %c0_25 = arith.constant 0 : index
      %40 = vector.load %arg6[%c0_24, %c0_25] : memref<16x1xf32, #tpu.memory_space<vmem>>, vector<16x1xf32>
      tpu.vector_store %arg6[%c0_24, %c0_25], %39 {strides = array<i32>} : memref<16x1xf32, #tpu.memory_space<vmem>>, vector<16x1xf32>,
      %cst_26 = arith.constant 0.000000e+00 : f32
      %41 = vector.broadcast %cst_26 : f32 to vector<16x1xf32>
      %c0_27 = arith.constant 0 : index
      %c0_28 = arith.constant 0 : index
      %42 = vector.load %arg7[%c0_27, %c0_28] : memref<16x1xf32, #tpu.memory_space<vmem>>, vector<16x1xf32>
      tpu.vector_store %arg7[%c0_27, %c0_28], %41 {strides = array<i32>} : memref<16x1xf32, #tpu.memory_space<vmem>>, vector<16x1xf32>,
      %cst_29 = arith.constant 0.000000e+00 : f32
      %43 = vector.broadcast %cst_29 : f32 to vector<16x1xf32>
      %c0_30 = arith.constant 0 : index
      %c0_31 = arith.constant 0 : index
      %44 = vector.load %arg8[%c0_30, %c0_31] : memref<16x1xf32, #tpu.memory_space<vmem>>, vector<16x1xf32>
      tpu.vector_store %arg8[%c0_30, %c0_31], %43 {strides = array<i32>} : memref<16x1xf32, #tpu.memory_space<vmem>>, vector<16x1xf32>,
    } else {
    }
    %c0 = arith.constant 0 : index
    %c0_1 = arith.constant 0 : index
    %3 = vector.load %arg2[%c0, %c0_1] : memref<16x1280xbf16, #tpu.memory_space<vmem>>, vector<16x1280xbf16>
    %c0_2 = arith.constant 0 : index
    %c0_3 = arith.constant 0 : index
    %4 = vector.load %arg3[%c0_2, %c0_3] : memref<1280x128xbf16, #tpu.memory_space<vmem>>, vector<1280x128xbf16>
    %cst = arith.constant dense<0.000000e+00> : vector<16x128xf32>
    %5 = tpu.matmul %3, %4, %cst {dimension_numbers = #tpu.dot_dimension_numbers<[1], [0], [0], [1], [0, 0, 1, 1], [], []>} : vector<16x1280xbf16>, vector<1280x128xbf16>, vector<16x128xf32> -> vector<16x128xf32>
    %6 = tpu.iota {dimensions = array<i32: 1>} : vector<16x128xi32>
    %c128_i32 = arith.constant 128 : i32
    %7 = arith.muli %arg1, %c128_i32 : i32
    %8 = vector.broadcast %7 : i32 to vector<16x128xi32>
    %9 = arith.addi %6, %8 : vector<16x128xi32>
    %c0_4 = arith.constant 0 : index
    %c0_5 = arith.constant 0 : index
    %10 = vector.load %arg4[%c0_4, %c0_5] : memref<16x1xi32, #tpu.memory_space<vmem>>, vector<16x1xi32>
    %c0_6 = arith.constant 0 : index
    %c0_7 = arith.constant 0 : index
    %11 = vector.load %arg8[%c0_6, %c0_7] : memref<16x1xf32, #tpu.memory_space<vmem>>, vector<16x1xf32>
    %12 = vector.broadcast %10 : vector<16x1xi32> to vector<16x128xi32>
    %13 = arith.cmpi eq, %9, %12 : vector<16x128xi32>
    %cst_8 = arith.constant 0.000000e+00 : f32
    %14 = vector.broadcast %cst_8 : f32 to vector<16x128xf32>
    %15 = arith.select %13, %5, %14 : vector<16x128xi1>, vector<16x128xf32>
    %cst_9 = arith.constant dense<0.000000e+00> : vector<16xf32>
    %16 = vector.multi_reduction <add>, %15, %cst_9 [1] : vector<16x128xf32> to vector<16xf32>
    %17 = vector.shape_cast %16 : vector<16xf32> to vector<16x1xf32>
    %18 = arith.addf %11, %17 : vector<16x1xf32>
    %c0_10 = arith.constant 0 : index
    %c0_11 = arith.constant 0 : index
    %19 = vector.load %arg8[%c0_10, %c0_11] : memref<16x1xf32, #tpu.memory_space<vmem>>, vector<16x1xf32>
    tpu.vector_store %arg8[%c0_10, %c0_11], %18 {strides = array<i32>} : memref<16x1xf32, #tpu.memory_space<vmem>>, vector<16x1xf32>,
    %c0_12 = arith.constant 0 : index
    %c0_13 = arith.constant 0 : index
    %20 = vector.load %arg6[%c0_12, %c0_13] : memref<16x1xf32, #tpu.memory_space<vmem>>, vector<16x1xf32>
    %cst_14 = arith.constant dense<0xFF800000> : vector<16xf32>
    %21 = vector.multi_reduction <maximumf>, %5, %cst_14 [1] : vector<16x128xf32> to vector<16xf32>
    %22 = vector.shape_cast %21 : vector<16xf32> to vector<16x1xf32>
    %23 = arith.maximumf %20, %22 : vector<16x1xf32>
    %c0_15 = arith.constant 0 : index
    %c0_16 = arith.constant 0 : index
    %24 = vector.load %arg7[%c0_15, %c0_16] : memref<16x1xf32, #tpu.memory_space<vmem>>, vector<16x1xf32>
    %25 = arith.subf %20, %23 : vector<16x1xf32>
    %26 = math.exp %25 : vector<16x1xf32>
    %27 = arith.mulf %24, %26 : vector<16x1xf32>
    %28 = vector.broadcast %23 : vector<16x1xf32> to vector<16x128xf32>
    %29 = arith.subf %5, %28 : vector<16x128xf32>
    %30 = math.exp %29 : vector<16x128xf32>
    %cst_17 = arith.constant dense<0.000000e+00> : vector<16xf32>
    %31 = vector.multi_reduction <add>, %30, %cst_17 [1] : vector<16x128xf32> to vector<16xf32>
    %32 = vector.shape_cast %31 : vector<16xf32> to vector<16x1xf32>
    %33 = arith.addf %27, %32 : vector<16x1xf32>
    %c0_18 = arith.constant 0 : index
    %c0_19 = arith.constant 0 : index
    %34 = vector.load %arg7[%c0_18, %c0_19] : memref<16x1xf32, #tpu.memory_space<vmem>>, vector<16x1xf32>
    tpu.vector_store %arg7[%c0_18, %c0_19], %33 {strides = array<i32>} : memref<16x1xf32, #tpu.memory_space<vmem>>, vector<16x1xf32>,
    %c0_20 = arith.constant 0 : index
    %c0_21 = arith.constant 0 : index
    %35 = vector.load %arg6[%c0_20, %c0_21] : memref<16x1xf32, #tpu.memory_space<vmem>>, vector<16x1xf32>
    tpu.vector_store %arg6[%c0_20, %c0_21], %23 {strides = array<i32>} : memref<16x1xf32, #tpu.memory_space<vmem>>, vector<16x1xf32>,
    %c1_i32 = arith.constant 1 : i32
    %36 = arith.cmpi eq, %arg1, %c1_i32 : i32
    %37 = arith.extui %36 : i1 to i32
    %c0_i32_22 = arith.constant 0 : i32
    %38 = arith.cmpi ne, %37, %c0_i32_22 : i32
    scf.if %38 {
      %c0_23 = arith.constant 0 : index
      %c0_24 = arith.constant 0 : index
      %39 = vector.load %arg6[%c0_23, %c0_24] : memref<16x1xf32, #tpu.memory_space<vmem>>, vector<16x1xf32>
      %c0_25 = arith.constant 0 : index
      %c0_26 = arith.constant 0 : index
      %40 = vector.load %arg7[%c0_25, %c0_26] : memref<16x1xf32, #tpu.memory_space<vmem>>, vector<16x1xf32>
      %41 = math.log %40 : vector<16x1xf32>
      %42 = arith.addf %39, %41 : vector<16x1xf32>
      %c0_27 = arith.constant 0 : index
      %c0_28 = arith.constant 0 : index
      %43 = vector.load %arg8[%c0_27, %c0_28] : memref<16x1xf32, #tpu.memory_space<vmem>>, vector<16x1xf32>
      %44 = arith.subf %42, %43 : vector<16x1xf32>
      %c0_i32_29 = arith.constant 0 : i32
      %45 = vector.broadcast %c0_i32_29 : i32 to vector<16x1xi32>
      %46 = arith.cmpi slt, %10, %45 : vector<16x1xi32>
      %cst_30 = arith.constant 0.000000e+00 : f32
      %47 = vector.broadcast %cst_30 : f32 to vector<16x1xf32>
      %48 = arith.select %46, %47, %44 : vector<16x1xi1>, vector<16x1xf32>
      %49 = vector.shape_cast %48 : vector<16x1xf32> to vector<16x1xf32>
      %50 = vector.broadcast %49 : vector<16x1xf32> to vector<16x128xf32>
      %c0_31 = arith.constant 0 : index
      %c0_32 = arith.constant 0 : index
      %51 = vector.load %arg5[%c0_31, %c0_32] : memref<16x128xf32, #tpu.memory_space<vmem>>, vector<16x128xf32>
      tpu.vector_store %arg5[%c0_31, %c0_32], %50 {strides = array<i32>} : memref<16x128xf32, #tpu.memory_space<vmem>>, vector<16x128xf32>,
    } else {
    }
    return
  }
  func.func @transform_0(%arg0: i32, %arg1: i32) -> (i32, i32) {
    %c0_i32 = arith.constant 0 : i32
    %c0_i32_0 = arith.constant 0 : i32
    return %arg0, %c0_i32 : i32, i32
  }
  func.func @transform_1(%arg0: i32, %arg1: i32) -> (i32, i32) {
    %c0_i32 = arith.constant 0 : i32
    %c0_i32_0 = arith.constant 0 : i32
    return %c0_i32, %arg1 : i32, i32
  }
  func.func @transform_2(%arg0: i32, %arg1: i32) -> (i32, i32) {
    %c0_i32 = arith.constant 0 : i32
    %c0_i32_0 = arith.constant 0 : i32
    return %arg0, %c0_i32 : i32, i32
  }
  func.func @transform_3(%arg0: i32, %arg1: i32) -> (i32, i32) {
    %c0_i32 = arith.constant 0 : i32
    %c0_i32_0 = arith.constant 0 : i32
    return %arg0, %c0_i32 : i32, i32
  }
}

</mosaic_0001>

<bundles_post_ra>
// kernel: tpu_custom_call.1
= control target key start
LH: loop header
LB: loop body
LE: loop exit
PB: predicated region body
PF: predicated region fallthrough
CT: control target
= control target key end

     0   :  { %8 = vsyncpa [#allocation6], 0  ;;  %s2274_s0 = inlined_call_operand.hbm [shape: bf16[16,1280], index: 0, kind: input, shape index: {}]   ;;  %s2275_s1 = inlined_call_operand.hbm [shape: bf16[1280,256], index: 1, kind: input, shape index: {}]   ;;  %s2276_s2 = inlined_call_operand.vmem [shape: s32[16,1], index: 2, kind: input, shape index: {}]   ;;  %s2277_s3 = inlined_call_operand.hbm [shape: f32[16,128], index: 3, kind: output, shape index: {}]  }
   0x1   :  { %9 = vsyncpa [#allocation9], 0 }
   0x2   :  { %11 = vsyncpa [#allocation9 + $0x1], 0 }
   0x3   :  { %12 = vsyncpa [#allocation7], 0  ;;  %s2054_s12 = smov 0   ;;  %s2056_s13 = smov 0  }
   0x4   :  { %s2058_s14 = smov 0   ;;  %s2060_s15 = smov 0  }
   0x5   :  { %s2062_s16 = smov 0   ;;  %s2064_s17 = smov 0  }
   0x6 LB: > { %s1306_s18 = sadd.s32 4294967295, %s2019_s17   ;;  %p76_p0 = scmp.ne.s32.totalorder %s2003_s13, %s1999_s12  ;;  %s2019_s17 = sphi %s2064_s17, %s18_s17   ;;  %s2015_s16 = sphi %s2062_s16, %s2286_s16   ;;  %s2011_s15 = sphi %s2060_s15, %s2285_s15   ;;  %s2007_s14 = sphi %s2058_s14, %s2284_s14   ;;  %s2003_s13 = sphi %s2056_s13, %s2283_s13   ;;  %s1999_s12 = sphi %s2054_s12, %s2282_s12  }
   0x7   : > { %p2086_p1 = scmp.eq.s32.totalorder %s1306_s18, 0  ;;  %p1307_p2 = scmp.ge.s32.totalorder %s2019_s17, 1 }
   0x8   : > { %p139_p3 = scmp.lt.s32.totalorder %s2019_s17, 3  ;;  %s154_s23 = sshll.u32 %s2274_s0, 4  ;;  %s155_s23 = int_to_ptr.hbm [resolvable:$true] %s154_s23 }
   0x9   : > { %p2094_p4 = por %p2086_p1, %p76_p0  ;;  %s2021_s25 = smov [#allocation5]  }
   0xa   : > { %p2101_p5 = pnand %p1307_p2, %p139_p3  ;;  %s156_s26 = sshll.u32 %s2021_s25, 4  ;;  %s157_s26 = int_to_ptr.vmem [resolvable:$true] %s156_s26 }
   0xb   : > { %s2022_s27 = smov 640   ;;  %s2023_s28 = smov 40  }
   0xc   : > { %p1783_p6 = pneg %p2101_p5  ;;  %s27_s29 = sadd.s32 1, %s2015_s16 }
   0xd   : > { %p28_p8 = scmp.ge.s32.totalorder %s27_s29, 2  ;;  %s63_s30 = sadd.s32 1, %s2007_s14 }
   0xe   : > { %p1784_p7 = pnand %p1783_p6, %p2086_p1  ;;  %p70_p9 = scmp.ne.s32.totalorder %s2007_s14, %s2003_s13 }
   0xf   : > { %p71_p10 = scmp.eq.s32.totalorder %s2019_s17, 0  ;;  %s2288_s29 = smov (%p28_p8, %s27_s29), 0 }
  0x10   : > { %1786 = dma.hbm_to_vmem [thread:$0]  (!%p1784_p7), %s155_s23, 1280, %s157_s26, [#allocation6], %s2022_s27, %s2022_s27, %s2023_s28  }
  0x11   : > { %p2116_p11 = por %p71_p10, %p70_p9  ;;  %p1792_p12 = scmp.lt.s32.totalorder %s2019_s17, 2 }
  0x12   : > { %s60_s5 = ssub.s32 %s2015_s16, %s2288_s29  ;;  %s179_s6 = sand.u32 1, %s2007_s14  }
  0x13   : > { %p61_p13 = scmp.eq.s32.totalorder %s60_s5, 0  ;;  %s1771_s7 = smul.u32 640, %s179_s6 }
  0x14   : > { %s1311_s8 = sshll.u32 %s2015_s16, 2  ;;  %p1788_p0 = pnand %p1792_p12, %p2116_p11 }
  0x15   : > { %s2126_s9 = scalar_select %p61_p13, %s2007_s14, %s63_s30  }
  0x16   : > { %s187_s12 = scalar_lea.hbm %s2275_s1, %s1311_s8  ;;  %s183_s22 = scalar_lea.vmem [#allocation8], %s1771_s7 }
  0x17   : > { %s188_s21 = sshll.u32 %s187_s12, 4  ;;  %s190_s23 = sshll.u32 %s183_s22, 4  ;;  %s189_s21 = int_to_ptr.hbm [resolvable:$true] %s188_s21  ;;  %s191_s23 = int_to_ptr.vmem [resolvable:$true] %s190_s23 }
  0x18   : > { %s180_s25 = scalar_lea.sflag [#allocation9], %s179_s6  ;;  %s2024_s26 = smov 128  }
  0x19   : > { %s2025_s27 = smov 64   ;;  %s2026_s28 = smov 4  }
  0x1a   : > { %1790 = dma.hbm_to_vmem [thread:$0]  (!%p1788_p0), %s189_s21, 10240, %s191_s23, %s180_s25, %s2024_s26, %s2025_s27, %s2026_s28  }
  0x1b   : > { %202 = sbr.rel (%p2101_p5) target bundleno = 794 (0x31a), region = 32 }
  0x20   : > { %1986 = dma.done.wait (%p2086_p1), [#allocation6], 1280  }
  0x21   : > { %1988 = vsyncadd (%p2086_p1), [#allocation6], 4294966016  ;;  %s209_s30 = sand.u32 1, %s2003_s13  }
  0x22   : > { %s1772_s4 = smul.u32 640, %s209_s30  ;;  %s210_s5 = scalar_lea.sflag [#allocation9], %s209_s30 }
  0x24   : > { %s2142_s7 = scalar_lea.vmem [#allocation8], %s1772_s4 }
  0x25   : > { %1990 = dma.done.wait (%p2094_p4), %s210_s5, 10240  }
  0x26   : > { %1992 = vsyncadd (%p2094_p4), %s210_s5, 4294957056  ;;  %p1314_p2 = scmp.ne.s32.totalorder %s2011_s15, 0 }
  0x28   : > { %248 = sbr.rel (%p1314_p2) target bundleno = 52 (0x34), region = 44 }
  0x2d   : > { %vm249_vm0 = vcmask 7168   ;;  %v2027_v0 = vmov -inf   ;;  %v2028_v1 = vmov 0.0  }
  0x2e   : > { %250 = vst.msk [vmem:[#allocation2] sm:$0xff] %vm249_vm0, %v2027_v0 }
  0x2f   : > { %251 = vst.msk [vmem:[#allocation2 + $0x8] sm:$0xff] %vm249_vm0, %v2027_v0 }
  0x30   : > { %252 = vst.msk [vmem:[#allocation3] sm:$0xff] %vm249_vm0, %v2028_v1 }
  0x31   : > { %253 = vst.msk [vmem:[#allocation3 + $0x8] sm:$0xff] %vm249_vm0, %v2028_v1 }
  0x32   : > { %254 = vst.msk [vmem:[#allocation4] sm:$0xff] %vm249_vm0, %v2028_v1 }
  0x33   : > { %255 = vst.msk [vmem:[#allocation4 + $0x8] sm:$0xff] %vm249_vm0, %v2028_v1 }
  0x34 PF: > { %v1698_v2 = vld [vmem:[%s2142_s7 + $0x38] sm:$0xff]  ;;  %v1697_v6 = vld [vmem:[%s2142_s7 + $0x30] sm:$0xff]  ;;  %v1696_v10 = vld [vmem:[%s2142_s7 + $0x28] sm:$0xff]  ;;  %s1675_s8 = sshll.u32 %s2011_s15, 7  ;;  %vm1121_vm2 = vcmask 7168   ;;  %p1676_p1 = scmp.ne.s32.totalorder %s2011_s15, 1 }
  0x35   : > { %v1706_v3 = vld [vmem:[%s2142_s7 + $0x78] sm:$0xff]  ;;  %956 = vmatpush.bf16.msra.mxu0 %v1698_v2  ;;  %v1705_v7 = vld [vmem:[%s2142_s7 + $0x70] sm:$0xff]  ;;  %v1704_v11 = vld [vmem:[%s2142_s7 + $0x68] sm:$0xff] }
  0x36   : > { %v1714_v4 = vld [vmem:[%s2142_s7 + $0xb8] sm:$0xff]  ;;  %970 = vmatpush.bf16.msra.mxu1 %v1706_v3  ;;  %v1713_v8 = vld [vmem:[%s2142_s7 + $0xb0] sm:$0xff]  ;;  %v1712_v12 = vld [vmem:[%s2142_s7 + $0xa8] sm:$0xff] }
  0x37   : > { %v1722_v5 = vld [vmem:[%s2142_s7 + $0xf8] sm:$0xff]  ;;  %984 = vmatpush.bf16.msra.mxu2 %v1714_v4  ;;  %v1721_v9 = vld [vmem:[%s2142_s7 + $0xf0] sm:$0xff]  ;;  %v1720_v13 = vld [vmem:[%s2142_s7 + $0xe8] sm:$0xff] }
  0x38   : > { %998 = vmatpush.bf16.msra.mxu3 %v1722_v5  ;;  %v1695_v14 = vld [vmem:[%s2142_s7 + $0x20] sm:$0xff]  ;;  %v1694_v18 = vld [vmem:[%s2142_s7 + $0x18] sm:$0xff]  ;;  %v1693_v22 = vld [vmem:[%s2142_s7 + $0x10] sm:$0xff] }
  0x39   : > { %957 = vmatpush.bf16.msra.mxu0 %v1697_v6  ;;  %v1703_v15 = vld [vmem:[%s2142_s7 + $0x60] sm:$0xff]  ;;  %v1702_v19 = vld [vmem:[%s2142_s7 + $0x58] sm:$0xff]  ;;  %v1701_v23 = vld [vmem:[%s2142_s7 + $0x50] sm:$0xff] }
  0x3a   : > { %971 = vmatpush.bf16.msra.mxu1 %v1705_v7  ;;  %v1711_v16 = vld [vmem:[%s2142_s7 + $0xa0] sm:$0xff]  ;;  %v1710_v20 = vld [vmem:[%s2142_s7 + $0x98] sm:$0xff]  ;;  %v1709_v24 = vld [vmem:[%s2142_s7 + $0x90] sm:$0xff] }
  0x3b   : > { %985 = vmatpush.bf16.msra.mxu2 %v1713_v8  ;;  %v1719_v17 = vld [vmem:[%s2142_s7 + $0xe0] sm:$0xff]  ;;  %v1718_v21 = vld [vmem:[%s2142_s7 + $0xd8] sm:$0xff]  ;;  %v1717_v25 = vld [vmem:[%s2142_s7 + $0xd0] sm:$0xff] }
  0x3c   : > { %999 = vmatpush.bf16.msra.mxu3 %v1721_v9  ;;  %v1692_v26 = vld [vmem:[%s2142_s7 + $0x8] sm:$0xff]  ;;  %v1691_v30 = vld [vmem:[%s2142_s7] sm:$0xff]  ;;  %v1730_v33 = vld [vmem:[%s2142_s7 + $0x138] sm:$0xff] }
  0x3d   : > { %958 = vmatpush.bf16.msra.mxu0 %v1696_v10  ;;  %v1700_v27 = vld [vmem:[%s2142_s7 + $0x48] sm:$0xff]  ;;  %v1699_v31 = vld [vmem:[%s2142_s7 + $0x40] sm:$0xff]  ;;  %v1317_v34 = vld [vmem:[#allocation5] sm:$0xf] }
  0x3e   : > { %972 = vmatpush.bf16.msra.mxu1 %v1704_v11  ;;  %v1708_v28 = vld [vmem:[%s2142_s7 + $0x88] sm:$0xff]  ;;  %v1707_v32 = vld [vmem:[%s2142_s7 + $0x80] sm:$0xff]  ;;  %v1686_v35 = vld [vmem:[#allocation5 + $0x24] sm:$0xf0] }
  0x3f   : > { %986 = vmatpush.bf16.msra.mxu2 %v1712_v12  ;;  %v1716_v29 = vld [vmem:[%s2142_s7 + $0xc8] sm:$0xff]  ;;  %v1738_v36 = vld [vmem:[%s2142_s7 + $0x178] sm:$0xff]  ;;  %v1687_v38 = vld [vmem:[#allocation5 + $0x2c] sm:$0xf0]  ;;  %v1318_v43 = vor.u32 %v1686_v35, %v1317_v34 }
  0x40   : > { %1000 = vmatpush.bf16.msra.mxu3 %v1720_v13  ;;  %v1325_v37 = vld [vmem:[#allocation5 + $0x8] sm:$0xf]  ;;  %v1681_v40 = vld [vmem:[#allocation5 + $0x4] sm:$0xf]  ;;  %v1319_v41 = vld [vmem:[#allocation5 + $0x28] sm:$0xf0] }
  0x41   : > { %959 = vmatpush.bf16.msra.mxu0 %v1695_v14  ;;  %v1746_v39 = vld [vmem:[%s2142_s7 + $0x1b8] sm:$0xff]  ;;  %v1715_v42 = vld [vmem:[%s2142_s7 + $0xc0] sm:$0xff]  ;;  %v1326_v45 = vor.u32 %v1687_v38, %v1325_v37  ;;  %v1729_v48 = vld [vmem:[%s2142_s7 + $0x130] sm:$0xff]  ;;  %v1322_v49 = vor.u32 %v1681_v40, %v1319_v41 }
  0x42   : > { %973 = vmatpush.bf16.msra.mxu1 %v1703_v15  ;;  %v1754_v44 = vld [vmem:[%s2142_s7 + $0x1f8] sm:$0xff]  ;;  %v1327_v47 = vld [vmem:[#allocation5 + $0x30] sm:$0xf0]  ;;  %v1737_v50 = vld [vmem:[%s2142_s7 + $0x170] sm:$0xff] }
  0x43   : > { %987 = vmatpush.bf16.msra.mxu2 %v1711_v16  ;;  %v1682_v46 = vld [vmem:[#allocation5 + $0xc] sm:$0xf]  ;;  %v1745_v51 = vld [vmem:[%s2142_s7 + $0x1b0] sm:$0xff]  ;;  %v1728_v54 = vld [vmem:[%s2142_s7 + $0x128] sm:$0xff] }
  0x44   : > { %1001 = vmatpush.bf16.msra.mxu3 %v1719_v17  ;;  %v1330_v52 = vor.u32 %v1682_v46, %v1327_v47  ;;  %v1753_v53 = vld [vmem:[%s2142_s7 + $0x1f0] sm:$0xff]  ;;  %v1736_v55 = vld [vmem:[%s2142_s7 + $0x168] sm:$0xff]  ;;  %v1727_v58 = vld [vmem:[%s2142_s7 + $0x120] sm:$0xff] }
  0x45   : > { %960 = vmatpush.bf16.msra.mxu0 %v1694_v18  ;;  %v1744_v56 = vld [vmem:[%s2142_s7 + $0x1a8] sm:$0xff]  ;;  %v1735_v59 = vld [vmem:[%s2142_s7 + $0x160] sm:$0xff]  ;;  %v1726_v62 = vld [vmem:[%s2142_s7 + $0x118] sm:$0xff] }
  0x46   : > { %974 = vmatpush.bf16.msra.mxu1 %v1702_v19  ;;  %v1752_v57 = vld [vmem:[%s2142_s7 + $0x1e8] sm:$0xff]  ;;  %v1743_v60 = vld [vmem:[%s2142_s7 + $0x1a0] sm:$0xff]  ;;  %v1734_v63 = vld [vmem:[%s2142_s7 + $0x158] sm:$0xff] }
  0x47   : > { %988 = vmatpush.bf16.msra.mxu2 %v1710_v20  ;;  %v1751_v61 = vld [vmem:[%s2142_s7 + $0x1e0] sm:$0xff]  ;;  %v1742_v0 = vld [vmem:[%s2142_s7 + $0x198] sm:$0xff]  ;;  %v1725_v2 = vld [vmem:[%s2142_s7 + $0x110] sm:$0xff] }
  0x48   : > { %1002 = vmatpush.bf16.msra.mxu3 %v1718_v21  ;;  %v1750_v1 = vld [vmem:[%s2142_s7 + $0x1d8] sm:$0xff]  ;;  %v1733_v3 = vld [vmem:[%s2142_s7 + $0x150] sm:$0xff]  ;;  %v1724_v6 = vld [vmem:[%s2142_s7 + $0x108] sm:$0xff] }
  0x49   : > { %961 = vmatpush.bf16.msra.mxu0 %v1693_v22  ;;  %v1741_v4 = vld [vmem:[%s2142_s7 + $0x190] sm:$0xff]  ;;  %v1732_v7 = vld [vmem:[%s2142_s7 + $0x148] sm:$0xff]  ;;  %v1723_v10 = vld [vmem:[%s2142_s7 + $0x100] sm:$0xff] }
  0x4a   : > { %975 = vmatpush.bf16.msra.mxu1 %v1701_v23  ;;  %v1749_v5 = vld [vmem:[%s2142_s7 + $0x1d0] sm:$0xff]  ;;  %v1740_v8 = vld [vmem:[%s2142_s7 + $0x188] sm:$0xff]  ;;  %v1731_v11 = vld [vmem:[%s2142_s7 + $0x140] sm:$0xff] }
  0x4b   : > { %989 = vmatpush.bf16.msra.mxu2 %v1709_v24  ;;  %v1748_v9 = vld [vmem:[%s2142_s7 + $0x1c8] sm:$0xff]  ;;  %v1739_v12 = vld [vmem:[%s2142_s7 + $0x180] sm:$0xff]  ;;  %v1689_v16 = vld [vmem:[#allocation5 + $0x3c] sm:$0xf0] }
  0x4c   : > { %1003 = vmatpush.bf16.msra.mxu3 %v1717_v25  ;;  %v1333_v13 = vld [vmem:[#allocation5 + $0x10] sm:$0xf]  ;;  %v1688_v14 = vld [vmem:[#allocation5 + $0x34] sm:$0xf0]  ;;  %v1683_v17 = vld [vmem:[#allocation5 + $0x14] sm:$0xf] }
  0x4d   : > { %962 = vmatpush.bf16.msra.mxu0 %v1692_v26  ;;  %v1341_v15 = vld [vmem:[#allocation5 + $0x18] sm:$0xf]  ;;  %v1335_v18 = vld [vmem:[#allocation5 + $0x38] sm:$0xf0]  ;;  %v1762_v19 = vld [vmem:[%s2142_s7 + $0x238] sm:$0xff]  ;;  %v1334_v22 = vor.u32 %v1688_v14, %v1333_v13 }
  0x4e   : > { %976 = vmatpush.bf16.msra.mxu1 %v1700_v27  ;;  %v1770_v20 = vld [vmem:[%s2142_s7 + $0x278] sm:$0xff]  ;;  %v1747_v21 = vld [vmem:[%s2142_s7 + $0x1c0] sm:$0xff]  ;;  %v1684_v23 = vld [vmem:[#allocation5 + $0x1c] sm:$0xf]  ;;  %v1342_v25 = vor.u32 %v1689_v16, %v1341_v15  ;;  %v1338_v26 = vor.u32 %v1683_v17, %v1335_v18 }
  0x4f   : > { %990 = vmatpush.bf16.msra.mxu2 %v1708_v28  ;;  %v1343_v24 = vld [vmem:[#allocation5 + $0x40] sm:$0xf0]  ;;  %v1759_v34 = vld [vmem:[%s2142_s7 + $0x220] sm:$0xff]  ;;  %v1758_v37 = vld [vmem:[%s2142_s7 + $0x218] sm:$0xff] }
  0x50   : > { %1004 = vmatpush.bf16.msra.mxu3 %v1716_v29  ;;  %v1346_v27 = vor.u32 %v1684_v23, %v1343_v24  ;;  %v1761_v28 = vld [vmem:[%s2142_s7 + $0x230] sm:$0xff]  ;;  %v1767_v35 = vld [vmem:[%s2142_s7 + $0x260] sm:$0xff]  ;;  %v1766_v38 = vld [vmem:[%s2142_s7 + $0x258] sm:$0xff] }
  0x51   : > { %963 = vmatpush.bf16.msra.mxu0 %v1691_v30  ;;  %v1769_v29 = vld [vmem:[%s2142_s7 + $0x270] sm:$0xff]  ;;  %v2220_v30 = vld [vmem:[%s2276_s2] sm:$0xff]  ;;  %v1756_v41 = vld [vmem:[%s2142_s7 + $0x208] sm:$0xff] }
  0x52   : > { %977 = vmatpush.bf16.msra.mxu1 %v1699_v31  ;;  %v2029_v31 = vmov 0   ;;  %v1765_v40 = vld [vmem:[%s2142_s7 + $0x250] sm:$0xff]  ;;  %v1763_v46 = vld [vmem:[%s2142_s7 + $0x240] sm:$0xff] }
  0x53   : > { %991 = vmatpush.bf16.msra.mxu2 %v1707_v32  ;;  %1858 = vset.pattern.permute.xlu2 %v2029_v31  ;;  %v1760_v32 = vld [vmem:[%s2142_s7 + $0x228] sm:$0xff]  ;;  %v1685_v47 = vld [vmem:[#allocation5 + $0x24] sm:$0xf] }
  0x54   : > { %1005 = vmatpush.bf16.msra.mxu3 %v1715_v42  ;;  %964 = vmatmul.bf16.vlgmr.msra.gmra.mxu0 %v1318_v43  ;;  %v1764_v42 = vld [vmem:[%s2142_s7 + $0x248] sm:$0xff]  ;;  %v1755_v43 = vld [vmem:[%s2142_s7 + $0x200] sm:$0xff] }
  0x55   : > { %1012 = vmatpush.bf16.msrb.mxu0 %v1730_v33  ;;  %978 = vmatmul.bf16.vlgmr.msra.gmra.mxu1 %v1322_v49  ;;  %v1768_v33 = vld [vmem:[%s2142_s7 + $0x268] sm:$0xff] }
  0x56   : > { %1026 = vmatpush.bf16.msrb.mxu1 %v1738_v36  ;;  %992 = vmatmul.bf16.vlgmr.msra.gmra.mxu2 %v1326_v45  ;;  %v2230_v36 = vld [vmem:[%s2276_s2 + $0x8] sm:$0xff]  ;;  %v1690_v45 = vld [vmem:[#allocation5 + $0x44] sm:$0xf0] }
  0x57   : > { %1040 = vmatpush.bf16.msrb.mxu2 %v1746_v39  ;;  %1006 = vmatmul.bf16.vlgmr.msra.gmra.mxu3 %v1330_v52  ;;  %v1757_v39 = vld [vmem:[%s2142_s7 + $0x210] sm:$0xff] }
  0x58   : > { %1054 = vmatpush.bf16.msrb.mxu3 %v1754_v44  ;;  %1857 = vset.pattern.permute.xlu1 %v2029_v31  ;;  %v1349_v44 = vld [vmem:[#allocation5 + $0x20] sm:$0xf] }
  0x59   : > { %1013 = vmatpush.bf16.msrb.mxu0 %v1729_v48  ;;  %1106 = vperm.xlu2 %1858, %v2220_v30   ;;  %v1351_v48 = vld [vmem:[#allocation5 + $0x48] sm:$0xf0]  ;;  %v1350_v49 = vor.u32 %v1690_v45, %v1349_v44 }
  0x5a   : > { %1027 = vmatpush.bf16.msrb.mxu1 %v1737_v50  ;;  %1859 = vset.pattern.permute.xlu0 %v2029_v31  ;;  %v1354_v50 = vor.u32 %v1685_v47, %v1351_v48 }
  0x5b   : > { %1041 = vmatpush.bf16.msrb.mxu2 %v1745_v51 }
  0x5c   : > { %1055 = vmatpush.bf16.msrb.mxu3 %v1753_v53 }
  0x5d   : > { %1014 = vmatpush.bf16.msrb.mxu0 %v1728_v54 }
  0x5e   : > { %1028 = vmatpush.bf16.msrb.mxu1 %v1736_v55 }
  0x5f   : > { %1042 = vmatpush.bf16.msrb.mxu2 %v1744_v56 }
  0x60   : > { %1056 = vmatpush.bf16.msrb.mxu3 %v1752_v57 }
  0x61   : > { %1015 = vmatpush.bf16.msrb.mxu0 %v1727_v58  ;;  %1109 = vperm.xlu2 %1858, %v2230_v36  }
  0x62   : > { %1029 = vmatpush.bf16.msrb.mxu1 %v1735_v59 }
  0x63   : > { %1043 = vmatpush.bf16.msrb.mxu2 %v1743_v60 }
  0x64   : > { %1057 = vmatpush.bf16.msrb.mxu3 %v1751_v61 }
  0x65   : > { %1016 = vmatpush.bf16.msrb.mxu0 %v1726_v62 }
  0x66   : > { %1030 = vmatpush.bf16.msrb.mxu1 %v1734_v63 }
  0x67   : > { %1044 = vmatpush.bf16.msrb.mxu2 %v1742_v0 }
  0x68   : > { %1058 = vmatpush.bf16.msrb.mxu3 %v1750_v1 }
  0x69   : > { %1017 = vmatpush.bf16.msrb.mxu0 %v1725_v2 }
  0x6a   : > { %1031 = vmatpush.bf16.msrb.mxu1 %v1733_v3 }
  0x6b   : > { %1045 = vmatpush.bf16.msrb.mxu2 %v1741_v4 }
  0x6c   : > { %1059 = vmatpush.bf16.msrb.mxu3 %v1749_v5 }
  0x6d   : > { %1018 = vmatpush.bf16.msrb.mxu0 %v1724_v6 }
  0x6e   : > { %1032 = vmatpush.bf16.msrb.mxu1 %v1732_v7 }
  0x6f   : > { %1046 = vmatpush.bf16.msrb.mxu2 %v1740_v8 }
  0x70   : > { %1060 = vmatpush.bf16.msrb.mxu3 %v1748_v9 }
  0x71   : > { %1019 = vmatpush.bf16.msrb.mxu0 %v1723_v10 }
  0x72   : > { %1033 = vmatpush.bf16.msrb.mxu1 %v1731_v11 }
  0x73   : > { %1047 = vmatpush.bf16.msrb.mxu2 %v1739_v12 }
  0x74   : > { %1061 = vmatpush.bf16.msrb.mxu3 %v1747_v21  ;;  %1020 = vmatmul.bf16.vlgmr.msrb.gmra.mxu0 %v1334_v22 }
  0x75   : > { %1068 = vmatpush.bf16.msra.mxu0 %v1762_v19  ;;  %1034 = vmatmul.bf16.vlgmr.msrb.gmra.mxu1 %v1338_v26 }
  0x76   : > { %1082 = vmatpush.bf16.msra.mxu1 %v1770_v20  ;;  %1048 = vmatmul.bf16.vlgmr.msrb.gmra.mxu2 %v1342_v25  ;;  %v1096_v20 = vlaneseq  ;;  %v1099_v25 = vstv %s1675_s8 }
  0x77   : > { %1062 = vmatmul.bf16.vlgmr.msrb.gmra.mxu3 %v1346_v27 }
  0x78   : > { %v1097_v23 = vand.u32 127, %v1096_v20 }
  0x79   : > { %1069 = vmatpush.bf16.msra.mxu0 %v1761_v28 }
  0x7a   : > { %1083 = vmatpush.bf16.msra.mxu1 %v1769_v29  ;;  %v1100_v28 = vadd.s32 %v1099_v25, %v1097_v23 }
  0x7d   : > { %1070 = vmatpush.bf16.msra.mxu0 %v1760_v32  ;;  %v1124_v32 = vld [vmem:[#allocation2] sm:$0xff] }
  0x7e   : > { %1084 = vmatpush.bf16.msra.mxu1 %v1768_v33 }
  0x81   : > { %1071 = vmatpush.bf16.msra.mxu0 %v1759_v34 }
  0x82   : > { %1085 = vmatpush.bf16.msra.mxu1 %v1767_v35 }
  0x85   : > { %1072 = vmatpush.bf16.msra.mxu0 %v1758_v37  ;;  %v1125_v37 = vld [vmem:[#allocation2 + $0x8] sm:$0xff] }
  0x86   : > { %1086 = vmatpush.bf16.msra.mxu1 %v1766_v38 }
  0x89   : > { %1073 = vmatpush.bf16.msra.mxu0 %v1757_v39 }
  0x8a   : > { %1087 = vmatpush.bf16.msra.mxu1 %v1765_v40 }
  0x8d   : > { %1074 = vmatpush.bf16.msra.mxu0 %v1756_v41  ;;  %v1103_v41 = vld [vmem:[#allocation4] sm:$0xff] }
  0x8e   : > { %1088 = vmatpush.bf16.msra.mxu1 %v1764_v42 }
  0x91   : > { %1075 = vmatpush.bf16.msra.mxu0 %v1755_v43 }
  0x92   : > { %1089 = vmatpush.bf16.msra.mxu1 %v1763_v46 }
  0x94   : > { %1076 = vmatmul.bf16.vlgmr.msra.gmra.mxu0 %v1350_v49 }
  0x95   : > { %1090 = vmatmul.bf16.vlgmr.msra.gmra.mxu1 %v1354_v50 }
  0xb3   : > { %v1107_v29 = vpop.permute.xlu2 %1106 }
  0xb4   : > { %vm1111_vm1 = vcmp.eq.s32.totalorder %v1100_v28, %v1107_v29 }
  0xbb   : > { %v1110_v44 = vpop.permute.xlu2 %1109 }
  0xbc   : > { %vm1112_vm3 = vcmp.eq.s32.totalorder %v1100_v28, %v1110_v44 }
  0xd1   : > { %v965_v51 = vpop.f32.mrf.mxu0 }
  0xd2   : > { %v979_v52 = vpop.f32.mrf.mxu1 }
  0xd3   : > { %v980_v57 = vadd.f32 %v979_v52, %v965_v51 }
  0xd9   : > { %v993_v53 = vpop.f32.mrf.mxu2  ;;  %v967_v54 = vpop.f32.mrf.mxu0 }
  0xda   : > { %v981_v55 = vpop.f32.mrf.mxu1  ;;  %v1007_v56 = vpop.f32.mrf.mxu3  ;;  %v994_v58 = vadd.f32 %v993_v53, %v980_v57 }
  0xdb   : > { %v982_v0 = vadd.f32 %v981_v55, %v967_v54  ;;  %v1104_v54 = vld [vmem:[#allocation4 + $0x8] sm:$0xff] }
  0xdc   : > { %v1008_v61 = vadd.f32 %v1007_v56, %v994_v58 }
  0xe1   : > { %v995_v59 = vpop.f32.mrf.mxu2 }
  0xe2   : > { %v1009_v63 = vpop.f32.mrf.mxu3  ;;  %v996_v3 = vadd.f32 %v995_v59, %v982_v0 }
  0xe4   : > { %v1010_v8 = vadd.f32 %v1009_v63, %v996_v3 }
  0xf1   : > { %v1021_v60 = vpop.f32.mrf.mxu0 }
  0xf2   : > { %v1035_v62 = vpop.f32.mrf.mxu1  ;;  %v1022_v1 = vadd.f32 %v1021_v60, %v1008_v61  ;;  %v1132_v60 = vld [vmem:[#allocation3] sm:$0xff] }
  0xf4   : > { %v1036_v4 = vadd.f32 %v1035_v62, %v1022_v1  ;;  %v1133_v1 = vld [vmem:[#allocation3 + $0x8] sm:$0xff] }
  0xf9   : > { %v1049_v2 = vpop.f32.mrf.mxu2  ;;  %v1023_v5 = vpop.f32.mrf.mxu0 }
  0xfa   : > { %v1037_v6 = vpop.f32.mrf.mxu1  ;;  %v1063_v7 = vpop.f32.mrf.mxu3  ;;  %v1050_v9 = vadd.f32 %v1049_v2, %v1036_v4  ;;  %v1024_v10 = vadd.f32 %v1023_v5, %v1010_v8 }
  0xfc   : > { %v1064_v11 = vadd.f32 %v1063_v7, %v1050_v9  ;;  %v1038_v14 = vadd.f32 %v1037_v6, %v1024_v10 }
 0x101   : > { %v1051_v12 = vpop.f32.mrf.mxu2 }
 0x102   : > { %v1052_v17 = vadd.f32 %v1051_v12, %v1038_v14  ;;  %v1065_v19 = vpop.f32.mrf.mxu3 }
 0x104   : > { %v1066_v21 = vadd.f32 %v1065_v19, %v1052_v17 }
 0x111   : > { %v1077_v13 = vpop.f32.mrf.mxu0 }
 0x112   : > { %v1078_v15 = vadd.f32 %v1077_v13, %v1064_v11  ;;  %v1091_v16 = vpop.f32.mrf.mxu1 }
 0x114   : > { %v1092_v18 = vadd.f32 %v1091_v16, %v1078_v15 }
 0x116   : > { %1126 = vmax.xlane.f32.xlu0 %v1092_v18  ;;  %v1113_v31 = vsel %vm1111_vm1, %v1092_v18, 0.0 }
 0x119   : > { %v1079_v22 = vpop.f32.mrf.mxu0 }
 0x11a   : > { %v1080_v24 = vadd.f32 %v1079_v22, %v1066_v21  ;;  %v1093_v26 = vpop.f32.mrf.mxu1 }
 0x11c   : > { %v1094_v27 = vadd.f32 %v1093_v26, %v1080_v24 }
 0x11e   : > { %1128 = vmax.xlane.f32.xlu0 %v1094_v27  ;;  %v1114_v45 = vsel %vm1112_vm3, %v1094_v27, 0.0 }
 0x126   : > { %1115 = vadd.xlane.f32.xlu0 %v1113_v31 }
 0x189   : > { %v1127_v33 = vpop.xlane.xlu0 %1126 }
 0x18a   : > { %v1130_v34 = vmax.f32 %v1124_v32, %v1127_v33 }
 0x18c   : > { %v1134_v35 = vsub.f32 %v1124_v32, %v1130_v34  ;;  %1166 = vst.msk [vmem:[#allocation2] sm:$0xff] %vm1121_vm2, %v1130_v34  ;;  %1144 = vperm.xlu1 %1857, %v1130_v34  }
 0x18e   : > { %v1136_v57 = vmul.f32 1.442695, %v1134_v35 }
 0x191   : > { %v1129_v38 = vpop.xlane.xlu0 %1128 }
 0x192   : > { %v1131_v39 = vmax.f32 %v1125_v37, %v1129_v38 }
 0x194   : > { %v1135_v40 = vsub.f32 %v1125_v37, %v1131_v39  ;;  %1167 = vst.msk [vmem:[#allocation2 + $0x8] sm:$0xff] %vm1121_vm2, %v1131_v39  ;;  %1149 = vperm.xlu1 %1857, %v1131_v39  }
 0x196   : > { %v1138_v58 = vmul.f32 1.442695, %v1135_v40 }
 0x199   : > { %v1116_v42 = vpop.xlane.xlu0 %1115 }
 0x19a   : > { %v1119_v43 = vadd.f32 %v1116_v42, %v1103_v41 }
 0x19c   : > { %1122 = vst.msk [vmem:[#allocation4] sm:$0xff] %vm1121_vm2, %v1119_v43 }
 0x1be   : > { %1117 = vadd.xlane.f32.xlu1 %v1114_v45 }
 0x1fe   : > { %v1145_v46 = vpop.permute.xlu1 %1144 }
 0x1ff   : > { %v1152_v47 = vsub.f32 %v1092_v18, %v1145_v46 }
 0x201   : > { %v1154_v48 = vmul.f32 1.442695, %v1152_v47 }
 0x203   : > { %1860 = vpow2.f32 %v1154_v48 }
 0x206   : > { %v1150_v49 = vpop.permute.xlu1 %1149 }
 0x207   : > { %v1153_v50 = vsub.f32 %v1094_v27, %v1150_v49 }
 0x209   : > { %v1861_v51 = vpop.eup %1860  ;;  %v1156_v52 = vmul.f32 1.442695, %v1153_v50 }
 0x20a   : > { %1158 = vadd.xlane.f32.xlu2 %v1861_v51 }
 0x20b   : > { %1862 = vpow2.f32 %v1156_v52 }
 0x20c   : > { %1864 = vpow2.f32 %v1136_v57 }
 0x20d   : > { %1866 = vpow2.f32 %v1138_v58 }
 0x211   : > { %v1863_v53 = vpop.eup %1862 }
 0x212   : > { %1160 = vadd.xlane.f32.xlu0 %v1863_v53  ;;  %v1865_v59 = vpop.eup %1864 }
 0x213   : > { %v1140_v61 = vmul.f32 %v1865_v59, %v1132_v60  ;;  %v1867_v0 = vpop.eup %1866 }
 0x214   : > { %v1141_v2 = vmul.f32 %v1867_v0, %v1133_v1 }
 0x231   : > { %v1118_v55 = vpop.xlane.xlu1 %1117 }
 0x232   : > { %v1120_v56 = vadd.f32 %v1118_v55, %v1104_v54 }
 0x234   : > { %1123 = vst.msk [vmem:[#allocation4 + $0x8] sm:$0xff] %vm1121_vm2, %v1120_v56 }
 0x27d   : > { %v1159_v62 = vpop.xlane.xlu2 %1158 }
 0x27e   : > { %v1162_v63 = vadd.f32 %v1159_v62, %v1140_v61 }
 0x280   : > { %1164 = vst.msk [vmem:[#allocation3] sm:$0xff] %vm1121_vm2, %v1162_v63 }
 0x284   : > { %1171 = sbr.rel (%p1676_p1) target bundleno = 788 (0x314), region = 48 }
 0x285   : > { %v1161_v3 = vpop.xlane.xlu0 %1160 }
 0x286   : > { %v1163_v4 = vadd.f32 %v1161_v3, %v1141_v2 }
 0x288   : > { %1165 = vst.msk [vmem:[#allocation3 + $0x8] sm:$0xff] %vm1121_vm2, %v1163_v4 }
 0x289   : > { %v1174_v5 = vld [vmem:[#allocation3] sm:$0xff]  ;;  %v2030_v6 = vmov 0   ;;  %v1172_v9 = vld [vmem:[#allocation2] sm:$0xff]  ;;  %v1173_v13 = vld [vmem:[#allocation2 + $0x8] sm:$0xff]  ;;  %vm1186_vm4 = vcmp.lt.s32.totalorder %v2220_v30, 0  ;;  %vm1187_vm5 = vcmp.lt.s32.totalorder %v2230_v36, 0 }
 0x28a   : > { %1868 = vset.pattern.permute.xlu0 %v2030_v6  ;;  %1869 = vlog2.f32 %v1174_v5  ;;  %v1182_v12 = vld [vmem:[#allocation4] sm:$0xff]  ;;  %v1183_v18 = vld [vmem:[#allocation4 + $0x8] sm:$0xff] }
 0x28f   : > { %v1175_v7 = vld [vmem:[#allocation3 + $0x8] sm:$0xff] }
 0x290   : > { %1871 = vlog2.f32 %v1175_v7  ;;  %v1870_v8 = vpop.eup %1869 }
 0x291   : > { %v1177_v11 = vmul.f32 0.6931472, %v1870_v8 }
 0x293   : > { %v1180_v15 = vadd.f32 %v1177_v11, %v1172_v9 }
 0x295   : > { %v1184_v16 = vsub.f32 %v1180_v15, %v1182_v12 }
 0x296   : > { %v1872_v10 = vpop.eup %1871 }
 0x297   : > { %v1179_v14 = vmul.f32 0.6931472, %v1872_v10  ;;  %v1188_v19 = vsel %vm1186_vm4, 0.0, %v1184_v16 }
 0x298   : > { %1192 = vperm.xlu0 %1868, %v1188_v19  }
 0x299   : > { %v1181_v17 = vadd.f32 %v1179_v14, %v1173_v13 }
 0x29b   : > { %v1185_v20 = vsub.f32 %v1181_v17, %v1183_v18 }
 0x29d   : > { %v1189_v21 = vsel %vm1187_vm5, 0.0, %v1185_v20 }
 0x2a0   : > { %1197 = vperm.xlu0 %1868, %v1189_v21  }
 0x30a   : > { %v1193_v22 = vpop.permute.xlu0 %1192 }
 0x30b   : > { %1200 = vst [vmem:[#allocation10] sm:$0xff] %v1193_v22 }
 0x312   : > { %v1198_v23 = vpop.permute.xlu0 %1197 }
 0x313   : > { %1201 = vst [vmem:[#allocation10 + $0x8] sm:$0xff] %v1198_v23 }
 0x314 PF: > { %p1794_p3 = scmp.eq.s32.totalorder %s1306_s18, 1  ;;  %s1212_s11 = sshll.u32 %s2277_s3, 4  ;;  %s1213_s11 = int_to_ptr.hbm [resolvable:$true] %s1212_s11 }
 0x315   : > { %s2031_s12 = smov [#allocation10]   ;;  %s2032_s22 = smov 128  }
 0x316   : > { %s1210_s21 = sshll.u32 %s2031_s12, 4  ;;  %s2033_s23 = smov 8   ;;  %s1211_s21 = int_to_ptr.vmem [resolvable:$true] %s1210_s21 }
 0x317   : > { %1780 = dma.vmem_to_hbm [thread:$0]  (%p1794_p3), %s1211_s21, 256, %s1213_s11, [#allocation7], %s2032_s22, %s2032_s22, %s2033_s23  }
 0x318   : > { %1994 = dma.done.wait (%p1794_p3), [#allocation7], 256  }
 0x319   : > { %1996 = vsyncadd (%p1794_p3), [#allocation7], 4294967040 }
 0x31a PF: > { %s18_s17 = sadd.s32 1, %s2019_s17   ;;  %s2282_s12 = smov %s2003_s13 }
 0x31b   : > { %p15_p4 = scmp.ge.s32.totalorder %s18_s17, 4   ;;  %s2283_s13 = smov %s2007_s14 }
 0x31c   : > { %s2284_s14 = smov %s2126_s9  ;;  %s2285_s15 = smov %s2015_s16 }
 0x31d   : > { %s2286_s16 = smov %s2288_s29  ;;  %17 = sbr.rel (!%p15_p4) target bundleno = 6 (0x6), region = 87 }
 0x322   :  { %1229 = vsyncpa [#allocation6], 1 }
 0x323   :  { %1231 = vsyncpa [#allocation6 + $0x1], 1 }
 0x324   :  { %1232 = vsyncpa [#allocation9], 1 }
 0x325   :  { %1234 = vsyncpa [#allocation9 + $0x1], 1 }
 0x326   :  { %1235 = vsyncpa [#allocation7], 1 }
 0x327   :  { %1237 = vsyncpa [#allocation7 + $0x1], 1 }

</bundles_post_ra>
